<compile_context>
chip_gen: v5e
topology: v5e:2x2
jax: 0.10.0
libtpu: 0.0.40
codegen_flags: <defaults>
</compile_context>

<pallas_src>
import functools

import jax
import jax.numpy as jnp
from jax.experimental import pallas as pl
from jax.experimental.pallas import tpu as pltpu


# --------------------------------------------------------------------------
# Generation detection & budgets
# --------------------------------------------------------------------------

def _device_kind():
    try:
        return jax.devices()[0].device_kind.lower()
    except Exception:
        return ""


_KIND = _device_kind()
_IS_V7X = "v7" in _KIND
_NUM_TC_PER_CHIP = 2 if _IS_V7X else 1          # megacore sharding target
_BF16_VPU_NATIVE = ("v6" in _KIND) or ("v7" in _KIND)

# Block target sized against the f32 working set of one tile.
_TARGET_BLOCK_BYTES = (8 << 20) if _IS_V7X else (4 << 20)
# Scoped VMEM: < 64 MiB physical/TC on v7x, far below 128 MiB on v5e/v6e.
_VMEM_LIMIT_BYTES = (56 << 20) if _IS_V7X else (48 << 20)


def _round_up(x, m):
    return (x + m - 1) // m * m


def _sublane_multiple(dtype):
    # f32 -> 8, bf16 -> 16, int8/fp8 -> 32 (packed sublanes)
    return max(8, 32 // jnp.dtype(dtype).itemsize)


def _epilogue_dtype(x_dtype):
    # bf16 scale/shift + store where the VPU executes bf16 natively (v6e/v7x);
    # keep f32 otherwise (v5e has no bf16 VALU) and for non-bf16 inputs.
    if _BF16_VPU_NATIVE and jnp.dtype(x_dtype) == jnp.bfloat16:
        return jnp.bfloat16
    return jnp.float32


def _row_tile(n_rows, n_lanes, sub):
    """Row-tile sized for ~_TARGET_BLOCK_BYTES of f32 working set, sublane
    aligned, and capped so the 'parallel' grid axis covers every TensorCore."""
    tm = _TARGET_BLOCK_BYTES // max(1, n_lanes * 4)      # f32 working set
    tm = max(sub, (tm // sub) * sub)
    if n_rows <= sub:
        return n_rows                                    # block == full dim
    tm = min(tm, (n_rows // sub) * sub)                  # ragged tail -> Pallas masks
    if _NUM_TC_PER_CHIP > 1:
        cap = _round_up(-(-n_rows // _NUM_TC_PER_CHIP), sub)
        tm = min(tm, max(sub, cap))                      # grid length >= num TCs
    return tm


@functools.lru_cache(maxsize=None)
def _group_avg_matrix(group, c):
    """(G*C, G*C) block-diagonal matrix with 1/C entries: x @ P == per-group
    mean broadcast back over the group's lanes. Cached per (group, C)."""
    gc = group * c
    gid = jnp.arange(gc) // c
    return (gid[:, None] == gid[None, :]).astype(jnp.float32) / float(c)


# --------------------------------------------------------------------------
# Kernels
# --------------------------------------------------------------------------

def _ln_rows_kernel(x_ref, w_ref, b_ref, o_ref, *, eps):
    # x_ref: (TM, C); w_ref/b_ref: (1, C); normalize over the last (lane) axis.
    x = x_ref[...].astype(jnp.float32)
    mean = jnp.mean(x, axis=-1, keepdims=True)
    xc = x - mean
    var = jnp.mean(xc * xc, axis=-1, keepdims=True)       # biased variance (torch)
    inv = jax.lax.rsqrt(var + eps)
    # Epilogue runs in w_ref.dtype (f32, or bf16 on v6e/v7x for bf16 inputs).
    y = (xc * inv).astype(w_ref.dtype) * w_ref[...] + b_ref[...]
    o_ref[...] = y.astype(o_ref.dtype)


def _ln_grouped_kernel(x_ref, w_ref, b_ref, p_ref, o_ref, *, eps):
    # Lane-dense path for small C: each lane row holds G independent groups of
    # C channels.  p_ref is a (G*C, G*C) block-diagonal 1/C matrix, so x @ P is
    # the per-group mean broadcast over the group's lanes.  The matmuls use the
    # otherwise-idle MXU in this memory-bound kernel.
    x = x_ref[...].astype(jnp.float32)                     # (TG, G*C)
    p = p_ref[...]                                         # (G*C, G*C) f32
    mean = jnp.dot(x, p, preferred_element_type=jnp.float32)
    xc = x - mean
    var = jnp.dot(xc * xc, p, preferred_element_type=jnp.float32)
    inv = jax.lax.rsqrt(var + eps)
    y = (xc * inv).astype(w_ref.dtype) * w_ref[...] + b_ref[...]
    o_ref[...] = y.astype(o_ref.dtype)


def _ln_cfirst_kernel(x_ref, w_ref, b_ref, o_ref, *, eps):
    # x_ref: (C, T_HW) — channels on the sublane axis, spatial on the lane axis.
    # Reduce over axis 0 (C); lane-dense loads/stores, no transposes anywhere.
    x = x_ref[...].astype(jnp.float32)
    mean = jnp.mean(x, axis=0, keepdims=True)              # (1, T_HW)
    xc = x - mean
    var = jnp.mean(xc * xc, axis=0, keepdims=True)
    inv = jax.lax.rsqrt(var + eps)
    y = (xc * inv).astype(w_ref.dtype) * w_ref[...] + b_ref[...]   # (C,1) broadcast
    o_ref[...] = y.astype(o_ref.dtype)


def _ln_cfirst_batched_kernel(x_ref, w_ref, b_ref, o_ref, *, eps):
    # x_ref: (kN, C, HW) — several batch elements per block (small feature maps).
    x = x_ref[...].astype(jnp.float32)
    mean = jnp.mean(x, axis=1, keepdims=True)              # (kN, 1, HW)
    xc = x - mean
    var = jnp.mean(xc * xc, axis=1, keepdims=True)
    inv = jax.lax.rsqrt(var + eps)
    y = (xc * inv).astype(w_ref.dtype) * w_ref[...] + b_ref[...]   # (1,C,1) broadcast
    o_ref[...] = y.astype(o_ref.dtype)


# --------------------------------------------------------------------------
# Wrappers
# --------------------------------------------------------------------------

def _layernorm_rows_grouped(x2d, weight, bias, eps, group, ep_dtype):
    """channels_last, C | 128: fold `group` rows per lane-row so the kernel's
    last dim is exactly 128 lanes (lane-dense, unmasked stores)."""
    R, C = x2d.shape
    dt = x2d.dtype
    GC = group * C                                          # == 128
    Rg = R // group
    xf = x2d.reshape(Rg, GC)                                # contiguous -> free reshape

    sub = _sublane_multiple(dt)
    tg = _row_tile(Rg, GC, sub)
    grid = (pl.cdiv(Rg, tg),)

    p = _group_avg_matrix(group, C)
    wt = jnp.tile(weight.astype(ep_dtype), group).reshape(1, GC)
    bt = jnp.tile(bias.astype(ep_dtype), group).reshape(1, GC)

    out = pl.pallas_call(
        functools.partial(_ln_grouped_kernel, eps=eps),
        out_shape=jax.ShapeDtypeStruct((Rg, GC), dt),
        grid_spec=pltpu.PrefetchScalarGridSpec(
            num_scalar_prefetch=0,
            grid=grid,
            in_specs=[
                pl.BlockSpec((tg, GC), lambda i: (i, 0)),
                pl.BlockSpec((1, GC), lambda i: (0, 0)),
                pl.BlockSpec((1, GC), lambda i: (0, 0)),
                pl.BlockSpec((GC, GC), lambda i: (0, 0)),
            ],
            out_specs=pl.BlockSpec((tg, GC), lambda i: (i, 0)),
        ),
        compiler_params=pltpu.CompilerParams(
            dimension_semantics=("parallel",),
            vmem_limit_bytes=_VMEM_LIMIT_BYTES),
    )(xf, wt, bt, p)
    return out.reshape(R, C)


def _layernorm_rows(x2d, weight, bias, eps):
    """LayerNorm over the last axis of an (R, C) array (channels_last)."""
    R, C = x2d.shape
    dt = x2d.dtype
    ep_dtype = _epilogue_dtype(dt)

    # Lane-dense fold when C is a small divisor of 128 and rows fold evenly.
    if C < 128 and 128 % C == 0:
        group = 128 // C
        if R % group == 0:
            return _layernorm_rows_grouped(x2d, weight, bias, eps, group, ep_dtype)
    # TODO(synk): extend the lane-dense fold to C not dividing 128 (e.g. C=192
    # -> GC=384) once the averaging matmul is reformulated cheaply enough to
    # stay off the f32-MXU roofline on v5e; skipped to avoid a regression.

    sub = _sublane_multiple(dt)
    tm = _row_tile(R, C, sub)
    grid = (pl.cdiv(R, tm),)

    w2 = weight.reshape(1, C).astype(ep_dtype)
    b2 = bias.reshape(1, C).astype(ep_dtype)

    return pl.pallas_call(
        functools.partial(_ln_rows_kernel, eps=eps),
        out_shape=jax.ShapeDtypeStruct((R, C), dt),
        grid_spec=pltpu.PrefetchScalarGridSpec(
            num_scalar_prefetch=0,
            grid=grid,
            in_specs=[
                pl.BlockSpec((tm, C), lambda i: (i, 0)),
                pl.BlockSpec((1, C), lambda i: (0, 0)),
                pl.BlockSpec((1, C), lambda i: (0, 0)),
            ],
            out_specs=pl.BlockSpec((tm, C), lambda i: (i, 0)),
        ),
        compiler_params=pltpu.CompilerParams(
            dimension_semantics=("parallel",),
            vmem_limit_bytes=_VMEM_LIMIT_BYTES),
    )(x2d, w2, b2)


def _layernorm_channels_first(x, weight, bias, eps):
    """NCHW LayerNorm over dim 1 without any transpose: reshape to (N, C, H*W)
    and reduce over the sublane (C) axis with H*W on the lane axis."""
    N, C, H, W = x.shape
    HW = H * W
    dt = x.dtype
    ep_dtype = _epilogue_dtype(dt)
    x3 = x.reshape(N, C, HW)                                 # contiguous -> free reshape

    per_n_bytes = C * HW * 4                                 # f32 working set per batch elem

    # Small feature maps: fold several batch elements into one block so the
    # grid isn't N tiny steps dominated by per-step overhead.
    if N >= 2 and 2 * per_n_bytes <= _TARGET_BLOCK_BYTES:
        kN = min(N, max(1, _TARGET_BLOCK_BYTES // per_n_bytes))
        if _NUM_TC_PER_CHIP > 1:
            kN = min(kN, -(-N // _NUM_TC_PER_CHIP))          # grid >= num TCs
        kN = max(1, kN)
        grid = (pl.cdiv(N, kN),)

        w3 = weight.reshape(1, C, 1).astype(ep_dtype)
        b3 = bias.reshape(1, C, 1).astype(ep_dtype)

        out = pl.pallas_call(
            functools.partial(_ln_cfirst_batched_kernel, eps=eps),
            out_shape=jax.ShapeDtypeStruct((N, C, HW), dt),
            grid_spec=pltpu.PrefetchScalarGridSpec(
                num_scalar_prefetch=0,
                grid=grid,
                in_specs=[
                    pl.BlockSpec((kN, C, HW), lambda i: (i, 0, 0)),
                    pl.BlockSpec((1, C, 1), lambda i: (0, 0, 0)),
                    pl.BlockSpec((1, C, 1), lambda i: (0, 0, 0)),
                ],
                out_specs=pl.BlockSpec((kN, C, HW), lambda i: (i, 0, 0)),
            ),
            compiler_params=pltpu.CompilerParams(
                dimension_semantics=("parallel",),
                vmem_limit_bytes=_VMEM_LIMIT_BYTES),
        )(x3, w3, b3)
        return out.reshape(N, C, H, W)

    # Large feature maps: tile the HW (lane) axis.
    if HW <= 128:
        t_hw = HW                                            # block == full dim
    else:
        t_hw = _TARGET_BLOCK_BYTES // max(1, C * 4)          # f32 working set
        t_hw = max(128, (t_hw // 128) * 128)
        t_hw = min(t_hw, (HW // 128) * 128)                  # ragged tail handled by Pallas
        if _NUM_TC_PER_CHIP > 1 and N == 1:
            cap = max(128, _round_up(-(-HW // _NUM_TC_PER_CHIP), 128))
            t_hw = min(t_hw, cap)                            # keep both TCs busy when N == 1
    grid = (N, pl.cdiv(HW, t_hw))

    w2 = weight.reshape(C, 1).astype(ep_dtype)
    b2 = bias.reshape(C, 1).astype(ep_dtype)

    out = pl.pallas_call(
        functools.partial(_ln_cfirst_kernel, eps=eps),
        out_shape=jax.ShapeDtypeStruct((N, C, HW), dt),
        grid_spec=pltpu.PrefetchScalarGridSpec(
            num_scalar_prefetch=0,
            grid=grid,
            in_specs=[
                pl.BlockSpec((None, C, t_hw), lambda n, j: (n, 0, j)),
                pl.BlockSpec((C, 1), lambda n, j: (0, 0)),
                pl.BlockSpec((C, 1), lambda n, j: (0, 0)),
            ],
            out_specs=pl.BlockSpec((None, C, t_hw), lambda n, j: (n, 0, j)),
        ),
        compiler_params=pltpu.CompilerParams(
            dimension_semantics=("parallel", "parallel"),
            vmem_limit_bytes=_VMEM_LIMIT_BYTES),
    )(x3, w2, b2)
    return out.reshape(N, C, H, W)


class LayerNormPallas:
    """Mirror of the PyTorch LayerNorm module (deterministic init: ones/zeros)."""

    def __init__(self, normalized_shape, eps=1e-6, data_format="channels_last"):
        if data_format not in ["channels_last", "channels_first"]:
            raise NotImplementedError
        self.weight = jnp.ones((normalized_shape,), dtype=jnp.float32)
        self.bias = jnp.zeros((normalized_shape,), dtype=jnp.float32)
        self.eps = eps
        self.data_format = data_format
        self.normalized_shape = (normalized_shape,)

    def __call__(self, x):
        C = self.normalized_shape[0]
        if self.data_format == "channels_last":
            assert x.shape[-1] == C
            lead = x.shape[:-1]
            y = _layernorm_rows(x.reshape(-1, C), self.weight, self.bias, self.eps)
            return y.reshape(*lead, C)
        else:  # channels_first, NCHW input
            assert x.shape[1] == C
            return _layernorm_channels_first(x, self.weight, self.bias, self.eps)


# --------------------------------------------------------------------------
# References + tests
# --------------------------------------------------------------------------

def _reference_channels_first(x, w, b, eps):
    x = x.astype(jnp.float32)
    u = jnp.mean(x, axis=1, keepdims=True)
    s = jnp.mean((x - u) ** 2, axis=1, keepdims=True)
    xn = (x - u) / jnp.sqrt(s + eps)
    return w[:, None, None] * xn + b[:, None, None]


def _reference_channels_last(x, w, b, eps):
    x = x.astype(jnp.float32)
    u = jnp.mean(x, axis=-1, keepdims=True)
    s = jnp.mean((x - u) ** 2, axis=-1, keepdims=True)
    return (x - u) / jnp.sqrt(s + eps) * w + b


if __name__ == "__main__":
    key = jax.random.PRNGKey(0)
    keys = jax.random.split(key, 6)

    # 1) channels_first NCHW (batched-fold path)
    N, C, H, W = 2, 4, 16, 16
    x_cf = jax.random.normal(keys[0], (N, C, H, W), dtype=jnp.float32)
    ln_cf = LayerNormPallas(C, eps=1e-6, data_format="channels_first")
    ln_cf.weight = jnp.arange(1.0, C + 1.0, dtype=jnp.float32) * 0.5
    ln_cf.bias = jnp.arange(C, dtype=jnp.float32) * 0.1
    y_cf = jax.block_until_ready(ln_cf(x_cf))
    ref_cf = _reference_channels_first(x_cf, ln_cf.weight, ln_cf.bias, ln_cf.eps)
    assert y_cf.shape == x_cf.shape
    assert jnp.allclose(y_cf, ref_cf, atol=1e-5, rtol=1e-5)

    # 2) channels_last, small C (lane-dense grouped kernel, MXU reduction)
    x_cl = jax.random.normal(keys[1], (N, H, W, C), dtype=jnp.float32)
    ln_cl = LayerNormPallas(C, eps=1e-6, data_format="channels_last")
    ln_cl.weight = jnp.linspace(0.5, 1.5, C, dtype=jnp.float32)
    ln_cl.bias = jnp.linspace(-0.2, 0.2, C, dtype=jnp.float32)
    y_cl = jax.block_until_ready(ln_cl(x_cl))
    ref_cl = _reference_channels_last(x_cl, ln_cl.weight, ln_cl.bias, ln_cl.eps)
    assert y_cl.shape == x_cl.shape
    assert jnp.allclose(y_cl, ref_cl, atol=1e-5, rtol=1e-5)

    # 3) channels_last, larger C + ragged row count (generic kernel, masked tail)
    C3 = 192
    x_cl3 = jax.random.normal(keys[2], (5, 3, C3), dtype=jnp.float32)
    ln_cl3 = LayerNormPallas(C3, eps=1e-6, data_format="channels_last")
    ln_cl3.weight = jnp.linspace(0.8, 1.2, C3, dtype=jnp.float32)
    ln_cl3.bias = jnp.linspace(-0.1, 0.1, C3, dtype=jnp.float32)
    y_cl3 = jax.block_until_ready(ln_cl3(x_cl3))
    ref_cl3 = _reference_channels_last(x_cl3, ln_cl3.weight, ln_cl3.bias, ln_cl3.eps)
    assert jnp.allclose(y_cl3, ref_cl3, atol=1e-5, rtol=1e-5)

    # 4) channels_first with odd batch (batched fold, possibly ragged leading block)
    x_cf2 = jax.random.normal(keys[3], (3, 8, 8, 8), dtype=jnp.float32)
    ln_cf2 = LayerNormPallas(8, eps=1e-6, data_format="channels_first")
    ln_cf2.weight = jnp.linspace(0.7, 1.3, 8, dtype=jnp.float32)
    ln_cf2.bias = jnp.linspace(-0.3, 0.3, 8, dtype=jnp.float32)
    y_cf2 = jax.block_until_ready(ln_cf2(x_cf2))
    ref_cf2 = _reference_channels_first(x_cf2, ln_cf2.weight, ln_cf2.bias, ln_cf2.eps)
    assert jnp.allclose(y_cf2, ref_cf2, atol=1e-5, rtol=1e-5)

    # 5) channels_first, N=1 larger feature map (HW-tiled sublane-reduction path)
    x_cf3 = jax.random.normal(keys[4], (1, 8, 64, 64), dtype=jnp.float32)
    ln_cf3 = LayerNormPallas(8, eps=1e-6, data_format="channels_first")
    y_cf3 = jax.block_until_ready(ln_cf3(x_cf3))
    ref_cf3 = _reference_channels_first(x_cf3, ln_cf3.weight, ln_cf3.bias, ln_cf3.eps)
    assert jnp.allclose(y_cf3, ref_cf3, atol=1e-5, rtol=1e-5)

    # 6) channels_last, bf16 input (bf16 epilogue on v6e/v7x, f32 elsewhere)
    Cb = 128
    x_bf = jax.random.normal(keys[5], (2, 8, Cb), dtype=jnp.bfloat16)
    ln_bf = LayerNormPallas(Cb, eps=1e-6, data_format="channels_last")
    ln_bf.weight = jnp.linspace(0.9, 1.1, Cb, dtype=jnp.float32)
    ln_bf.bias = jnp.linspace(-0.05, 0.05, Cb, dtype=jnp.float32)
    y_bf = jax.block_until_ready(ln_bf(x_bf))
    ref_bf = _reference_channels_last(x_bf, ln_bf.weight, ln_bf.bias, ln_bf.eps)
    assert y_bf.dtype == jnp.bfloat16
    assert jnp.allclose(y_bf.astype(jnp.float32), ref_bf, atol=5e-2, rtol=5e-2)

    print("KERNEL_OK")
</pallas_src>

<mosaic_0001>
module attributes {stable_mosaic.version = 11 : i64} {
  func.func @_ln_cfirst_batched_kernel(%arg0: i32, %arg1: memref<2x4x256xf32, #tpu.memory_space<vmem>>, %arg2: memref<1x4x1xf32, #tpu.memory_space<vmem>>, %arg3: memref<1x4x1xf32, #tpu.memory_space<vmem>>, %arg4: memref<2x4x256xf32, #tpu.memory_space<vmem>>) attributes {dimension_semantics = [#tpu.dimension_semantics<parallel>], iteration_bounds = array<i64: 1>, scalar_prefetch = 0 : i64, scratch_operands = 0 : i64, tpu.core_type = #tpu.core_type<tc>, window_params = [{transform_indices = @transform_0, window_bounds = array<i64: 2, 4, 256>}, {pipeline_mode = #tpu.pipeline_mode<synchronous>, transform_indices = @transform_1, window_bounds = array<i64: 1, 4, 1>}, {pipeline_mode = #tpu.pipeline_mode<synchronous>, transform_indices = @transform_2, window_bounds = array<i64: 1, 4, 1>}, {transform_indices = @transform_3, window_bounds = array<i64: 2, 4, 256>}]} {
    %c0 = arith.constant 0 : index
    %c0_0 = arith.constant 0 : index
    %c0_1 = arith.constant 0 : index
    %0 = vector.load %arg1[%c0, %c0_0, %c0_1] : memref<2x4x256xf32, #tpu.memory_space<vmem>>, vector<2x4x256xf32>
    %cst = arith.constant dense<0.000000e+00> : vector<2x256xf32>
    %1 = vector.multi_reduction <add>, %0, %cst [1] : vector<2x4x256xf32> to vector<2x256xf32>
    %2 = vector.shape_cast %1 : vector<2x256xf32> to vector<2x1x256xf32>
    %cst_2 = arith.constant 4.000000e+00 : f32
    %3 = vector.broadcast %cst_2 : f32 to vector<2x1x256xf32>
    %4 = arith.divf %2, %3 : vector<2x1x256xf32>
    %5 = vector.broadcast %4 : vector<2x1x256xf32> to vector<2x4x256xf32>
    %6 = arith.subf %0, %5 : vector<2x4x256xf32>
    %7 = arith.mulf %6, %6 : vector<2x4x256xf32>
    %cst_3 = arith.constant dense<0.000000e+00> : vector<2x256xf32>
    %8 = vector.multi_reduction <add>, %7, %cst_3 [1] : vector<2x4x256xf32> to vector<2x256xf32>
    %9 = vector.shape_cast %8 : vector<2x256xf32> to vector<2x1x256xf32>
    %cst_4 = arith.constant 4.000000e+00 : f32
    %10 = vector.broadcast %cst_4 : f32 to vector<2x1x256xf32>
    %11 = arith.divf %9, %10 : vector<2x1x256xf32>
    %cst_5 = arith.constant 9.99999997E-7 : f32
    %12 = vector.broadcast %cst_5 : f32 to vector<2x1x256xf32>
    %13 = arith.addf %11, %12 : vector<2x1x256xf32>
    %14 = math.rsqrt %13 : vector<2x1x256xf32>
    %15 = vector.broadcast %14 : vector<2x1x256xf32> to vector<2x4x256xf32>
    %16 = arith.mulf %6, %15 : vector<2x4x256xf32>
    %c0_6 = arith.constant 0 : index
    %c0_7 = arith.constant 0 : index
    %c0_8 = arith.constant 0 : index
    %17 = vector.load %arg2[%c0_6, %c0_7, %c0_8] : memref<1x4x1xf32, #tpu.memory_space<vmem>>, vector<1x4x1xf32>
    %18 = vector.broadcast %17 : vector<1x4x1xf32> to vector<2x4x256xf32>
    %19 = arith.mulf %16, %18 : vector<2x4x256xf32>
    %c0_9 = arith.constant 0 : index
    %c0_10 = arith.constant 0 : index
    %c0_11 = arith.constant 0 : index
    %20 = vector.load %arg3[%c0_9, %c0_10, %c0_11] : memref<1x4x1xf32, #tpu.memory_space<vmem>>, vector<1x4x1xf32>
    %21 = vector.broadcast %20 : vector<1x4x1xf32> to vector<2x4x256xf32>
    %22 = arith.addf %19, %21 : vector<2x4x256xf32>
    %c0_12 = arith.constant 0 : index
    %c0_13 = arith.constant 0 : index
    %c0_14 = arith.constant 0 : index
    %23 = vector.load %arg4[%c0_12, %c0_13, %c0_14] : memref<2x4x256xf32, #tpu.memory_space<vmem>>, vector<2x4x256xf32>
    tpu.vector_store %arg4[%c0_12, %c0_13, %c0_14], %22 {strides = array<i32>} : memref<2x4x256xf32, #tpu.memory_space<vmem>>, vector<2x4x256xf32>,
    return
  }
  func.func @transform_0(%arg0: i32) -> (i32, i32, i32) {
    %c0_i32 = arith.constant 0 : i32
    %c0_i32_0 = arith.constant 0 : i32
    %c0_i32_1 = arith.constant 0 : i32
    return %arg0, %c0_i32, %c0_i32_0 : i32, i32, i32
  }
  func.func @transform_1(%arg0: i32) -> (i32, i32, i32) {
    %c0_i32 = arith.constant 0 : i32
    %c0_i32_0 = arith.constant 0 : i32
    %c0_i32_1 = arith.constant 0 : i32
    %c0_i32_2 = arith.constant 0 : i32
    return %c0_i32, %c0_i32_0, %c0_i32_1 : i32, i32, i32
  }
  func.func @transform_2(%arg0: i32) -> (i32, i32, i32) {
    %c0_i32 = arith.constant 0 : i32
    %c0_i32_0 = arith.constant 0 : i32
    %c0_i32_1 = arith.constant 0 : i32
    %c0_i32_2 = arith.constant 0 : i32
    return %c0_i32, %c0_i32_0, %c0_i32_1 : i32, i32, i32
  }
  func.func @transform_3(%arg0: i32) -> (i32, i32, i32) {
    %c0_i32 = arith.constant 0 : i32
    %c0_i32_0 = arith.constant 0 : i32
    %c0_i32_1 = arith.constant 0 : i32
    return %arg0, %c0_i32, %c0_i32_0 : i32, i32, i32
  }
}

</mosaic_0001>

<bundles_post_ra>
// kernel: tpu_custom_call.1
= control target key start
LH: loop header
LB: loop body
LE: loop exit
PB: predicated region body
PF: predicated region fallthrough
CT: control target
= control target key end

     0   :  { %8 = vsyncpa [#allocation3], 0  ;;  %s389_s0 = inlined_call_operand.hbm [shape: f32[2,4,256], index: 0, kind: input, shape index: {}]   ;;  %s390_s1 = inlined_call_operand.vmem [shape: f32[1,4,1], index: 1, kind: input, shape index: {}]   ;;  %s391_s2 = inlined_call_operand.vmem [shape: f32[1,4,1], index: 2, kind: input, shape index: {}]   ;;  %s392_s3 = inlined_call_operand.hbm [shape: f32[2,4,256], index: 3, kind: output, shape index: {}]  }
   0x1   :  { %9 = vsyncpa [#allocation4], 0  ;;  %s14_s14 = sshll.u32 %s389_s0, 4  ;;  %s316_s15 = smov [#allocation2]   ;;  %s15_s14 = int_to_ptr.hbm [resolvable:$true] %s14_s14 }
   0x2   :  { %s16_s16 = sshll.u32 %s316_s15, 4  ;;  %s317_s17 = smov 128   ;;  %s17_s16 = int_to_ptr.vmem [resolvable:$true] %s16_s16 }
   0x3   :  { %s318_s18 = smov 8  }
   0x4   :  { %22 = dma.hbm_to_vmem [thread:$0]  %s15_s14, 256, %s17_s16, [#allocation3], %s317_s17, %s317_s17, %s318_s18  }
   0x5   :  { %312 = dma.done.wait [#allocation3], 256  }
   0x6   :  { %313 = vsyncadd [#allocation3], 4294967040  ;;  %v319_v0 = vmov 0   ;;  %v201_v1 = vld [vmem:[%s390_s1] sm:$0xf]  ;;  %v320_v2 = vmov 4.0  }
   0x7   :  { %253 = vset.pattern.permute.xlu0 %v319_v0  ;;  %254 = vrcp.f32 %v320_v2  ;;  %v213_v3 = vld [vmem:[%s391_s2] sm:$0xf]  ;;  %v31_v4 = vld [vmem:[#allocation2] sm:$0xff]  ;;  %v32_v5 = vld [vmem:[#allocation2 + $0x8] sm:$0xff]  ;;  %vm46_vm0 = vcmask 1043456   ;;  %s322_s1 = smov [#allocation5]  }
   0x8   :  { %204 = vperm.xlu0 %253, %v201_v1   ;;  %35 = vst [vmem:[#allocation1] ss:$2 sm:$0xff] %v31_v4  ;;  %s231_s2 = sshll.u32 %s322_s1, 4  ;;  %s233_s24 = sshll.u32 %s392_s3, 4  ;;  %s232_s2 = int_to_ptr.vmem [resolvable:$true] %s231_s2  ;;  %s234_s24 = int_to_ptr.hbm [resolvable:$true] %s233_s24 }
   0x9   :  { %39 = vst [vmem:[#allocation1 + $0x10] ss:$2 sm:$0xff] %v32_v5 }
   0xd   :  { %v255_v6 = vpop.eup %254 }
   0xe   :  { %v76_v7 = vmul.f32 4.0, %v255_v6  ;;  %vm80_vm1 = vweird.f32 %v255_v6 }
   0xf   :  { %v37_v9 = vld.sshfl [vmem:[#allocation1 + $0x8] sm:$0xff pattern:$0x75316420]  ;;  %v36_v12 = vld.sshfl [vmem:[#allocation1] sm:$0xff pattern:$0x75316420] }
  0x10   :  { %216 = vperm.xlu0 %253, %v213_v3   ;;  %v77_v8 = vsub.f32 1.0, %v76_v7  ;;  %v41_v10 = vld.sshfl [vmem:[#allocation1 + $0x18] sm:$0xff pattern:$0x75316420]  ;;  %v54_v11 = vsel %vm46_vm0, %v37_v9, 0.0  ;;  %v47_v14 = vsel %vm46_vm0, %v36_v12, 0.0 }
  0x11   :  { %v40_v13 = vld.sshfl [vmem:[#allocation1 + $0x10] sm:$0xff pattern:$0x75316420]  ;;  %v55_v15 = vrot.slane %v54_v11, 4  ;;  %v68_v17 = vsel %vm46_vm0, %v41_v10, 0.0  ;;  %v48_v19 = vrot.slane %v47_v14, 4 }
  0x12   :  { %v61_v16 = vsel %vm46_vm0, %v40_v13, 0.0  ;;  %v78_v18 = vmul.f32 %v255_v6, %v77_v8  ;;  %v69_v21 = vrot.slane %v68_v17, 4 }
  0x13   :  { %v62_v20 = vrot.slane %v61_v16, 4  ;;  %v56_v22 = vadd.f32 %v55_v15, %v54_v11  ;;  %v49_v23 = vadd.f32 %v48_v19, %v47_v14 }
  0x14   :  { %v70_v25 = vadd.f32 %v69_v21, %v68_v17  ;;  %v79_v27 = vadd.f32 %v255_v6, %v78_v18 }
  0x15   :  { %v63_v24 = vadd.f32 %v62_v20, %v61_v16  ;;  %v57_v26 = vrot.slane %v56_v22, 2  ;;  %v50_v28 = vrot.slane %v49_v23, 2 }
  0x16   :  { %v71_v30 = vrot.slane %v70_v25, 2  ;;  %v81_v36 = vsel %vm80_vm1, %v255_v6, %v79_v27 }
  0x17   :  { %v64_v29 = vrot.slane %v63_v24, 2  ;;  %v58_v31 = vadd.f32 %v57_v26, %v56_v22  ;;  %v51_v32 = vadd.f32 %v50_v28, %v49_v23 }
  0x18   :  { %v72_v34 = vadd.f32 %v71_v30, %v70_v25 }
  0x19   :  { %v65_v33 = vadd.f32 %v64_v29, %v63_v24  ;;  %v59_v35 = vrot.slane %v58_v31, 1  ;;  %v52_v37 = vrot.slane %v51_v32, 1 }
  0x1a   :  { %v73_v39 = vrot.slane %v72_v34, 1 }
  0x1b   :  { %v66_v38 = vrot.slane %v65_v33, 1  ;;  %v60_v40 = vadd.f32 %v59_v35, %v58_v31  ;;  %v53_v41 = vadd.f32 %v52_v37, %v51_v32 }
  0x1c   :  { %v74_v43 = vadd.f32 %v73_v39, %v72_v34 }
  0x1d   :  { %v67_v42 = vadd.f32 %v66_v38, %v65_v33  ;;  %v83_v44 = vmul.f32 %v81_v36, %v60_v40  ;;  %v82_v45 = vmul.f32 %v81_v36, %v53_v41 }
  0x1e   :  { %v85_v47 = vmul.f32 %v81_v36, %v74_v43 }
  0x1f   :  { %v84_v46 = vmul.f32 %v81_v36, %v67_v42  ;;  %v90_v48 = vrot.slane %v83_v44, 4 }
  0x20   :  { %v91_v49 = vrot.slane %v85_v47, 4 }
  0x21   :  { %v92_v50 = vsel %vm46_vm0, %v82_v45, %v90_v48 }
  0x22   :  { %v93_v51 = vsel %vm46_vm0, %v84_v46, %v91_v49  ;;  %v361_v52 = vsub.f32 %v31_v4, %v92_v50 }
  0x23   :  { %v363_v53 = vsub.f32 %v32_v5, %v93_v51 }
  0x24   :  { %v98_v54 = vmul.f32 %v361_v52, %v361_v52 }
  0x25   :  { %v99_v55 = vmul.f32 %v363_v53, %v363_v53 }
  0x26   :  { %102 = vst [vmem:[#allocation1] ss:$2 sm:$0xff] %v98_v54 }
  0x27   :  { %106 = vst [vmem:[#allocation1 + $0x10] ss:$2 sm:$0xff] %v99_v55 }
  0x2d   :  { %v104_v56 = vld.sshfl [vmem:[#allocation1 + $0x8] sm:$0xff pattern:$0x75316420]  ;;  %v103_v57 = vld.sshfl [vmem:[#allocation1] sm:$0xff pattern:$0x75316420] }
  0x2e   :  { %v107_v58 = vld.sshfl [vmem:[#allocation1 + $0x10] sm:$0xff pattern:$0x75316420]  ;;  %v108_v59 = vld.sshfl [vmem:[#allocation1 + $0x18] sm:$0xff pattern:$0x75316420] }
  0x2f   :  { %v113_v60 = vsel %vm46_vm0, %v103_v57, 0.0  ;;  %v120_v61 = vsel %vm46_vm0, %v104_v56, 0.0  ;;  %v127_v62 = vsel %vm46_vm0, %v107_v58, 0.0  ;;  %v134_v2 = vsel %vm46_vm0, %v108_v59, 0.0 }
  0x30   :  { %v114_v63 = vrot.slane %v113_v60, 4  ;;  %v121_v0 = vrot.slane %v120_v61, 4  ;;  %v128_v1 = vrot.slane %v127_v62, 4  ;;  %v135_v3 = vrot.slane %v134_v2, 4 }
  0x32   :  { %v115_v4 = vadd.f32 %v114_v63, %v113_v60  ;;  %v122_v5 = vadd.f32 %v121_v0, %v120_v61  ;;  %v129_v6 = vadd.f32 %v128_v1, %v127_v62  ;;  %v136_v7 = vadd.f32 %v135_v3, %v134_v2 }
  0x34   :  { %v116_v8 = vrot.slane %v115_v4, 2  ;;  %v123_v9 = vrot.slane %v122_v5, 2  ;;  %v130_v10 = vrot.slane %v129_v6, 2  ;;  %v137_v11 = vrot.slane %v136_v7, 2 }
  0x36   :  { %v117_v12 = vadd.f32 %v116_v8, %v115_v4  ;;  %v124_v13 = vadd.f32 %v123_v9, %v122_v5  ;;  %v131_v14 = vadd.f32 %v130_v10, %v129_v6  ;;  %v138_v15 = vadd.f32 %v137_v11, %v136_v7 }
  0x37   :  { %v321_v5 = vmov 839922192  }
  0x38   :  { %v118_v16 = vrot.slane %v117_v12, 1  ;;  %v125_v17 = vrot.slane %v124_v13, 1  ;;  %v132_v18 = vrot.slane %v131_v14, 1  ;;  %v139_v19 = vrot.slane %v138_v15, 1 }
  0x39   :  { %v207_v6 = vunpack.c.l.s4 %v321_v5 }
  0x3a   :  { %v119_v20 = vadd.f32 %v118_v16, %v117_v12  ;;  %v126_v21 = vadd.f32 %v125_v17, %v124_v13  ;;  %v133_v22 = vadd.f32 %v132_v18, %v131_v14  ;;  %v140_v23 = vadd.f32 %v139_v19, %v138_v15 }
  0x3b   :  { %v208_v8 = vunpack.c.0.s8 %v207_v6 }
  0x3c   :  { %v141_v24 = vmul.f32 %v119_v20, %v81_v36  ;;  %v142_v25 = vmul.f32 %v126_v21, %v81_v36  ;;  %v143_v26 = vmul.f32 %v133_v22, %v81_v36  ;;  %v144_v27 = vmul.f32 %v140_v23, %v81_v36 }
  0x3e   :  { %v145_v28 = vadd.f32 1e-06, %v141_v24  ;;  %v146_v29 = vadd.f32 1e-06, %v142_v25  ;;  %v147_v30 = vadd.f32 1e-06, %v143_v26 }
  0x3f   :  { %v148_v31 = vadd.f32 1e-06, %v144_v27 }
  0x40   :  { %256 = vrsqrt.f32 %v145_v28  ;;  %vm165_vm2 = vweird.f32 %v146_v29  ;;  %vm155_vm7 = vweird.f32 %v145_v28  ;;  %vm175_vm11 = vweird.f32 %v147_v30 }
  0x41   :  { %258 = vrsqrt.f32 %v146_v29  ;;  %vm185_vm5 = vweird.f32 %v148_v31 }
  0x42   :  { %260 = vrsqrt.f32 %v147_v30 }
  0x43   :  { %262 = vrsqrt.f32 %v148_v31 }
  0x46   :  { %v257_v32 = vpop.eup %256 }
  0x47   :  { %v259_v33 = vpop.eup %258  ;;  %v150_v34 = vmul.f32 %v257_v32, %v145_v28  ;;  %vm156_vm8 = vweird.f32 %v257_v32 }
  0x48   :  { %v261_v35 = vpop.eup %260  ;;  %v160_v37 = vmul.f32 %v259_v33, %v146_v29  ;;  %vm166_vm3 = vweird.f32 %v259_v33  ;;  %vm157_vm10 = vmor %vm155_vm7, %vm156_vm8 }
  0x49   :  { %v263_v38 = vpop.eup %262  ;;  %v151_v39 = vmul.f32 %v257_v32, %v150_v34  ;;  %v170_v40 = vmul.f32 %v261_v35, %v147_v30  ;;  %vm373_vm4 = vmor %vm165_vm2, %vm166_vm3  ;;  %vm176_vm12 = vweird.f32 %v261_v35 }
  0x4a   :  { %v161_v41 = vmul.f32 %v259_v33, %v160_v37  ;;  %v180_v42 = vmul.f32 %v263_v38, %v148_v31  ;;  %vm186_vm6 = vweird.f32 %v263_v38  ;;  %vm177_vm13 = vmor %vm175_vm11, %vm176_vm12 }
  0x4b   :  { %v152_v43 = vmul.f32 0.5, %v151_v39  ;;  %v171_v36 = vmul.f32 %v261_v35, %v170_v40  ;;  %vm187_vm9 = vmor %vm185_vm5, %vm186_vm6 }
  0x4c   :  { %v162_v44 = vmul.f32 0.5, %v161_v41  ;;  %v181_v45 = vmul.f32 %v263_v38, %v180_v42 }
  0x4d   :  { %v153_v46 = vsub.f32 1.5, %v152_v43  ;;  %v172_v47 = vmul.f32 0.5, %v171_v36 }
  0x4e   :  { %v163_v48 = vsub.f32 1.5, %v162_v44  ;;  %v182_v50 = vmul.f32 0.5, %v181_v45 }
  0x4f   :  { %v154_v51 = vmul.f32 %v257_v32, %v153_v46  ;;  %v173_v54 = vsub.f32 1.5, %v172_v47 }
  0x50   :  { %v164_v55 = vmul.f32 %v259_v33, %v163_v48  ;;  %v183_v56 = vsub.f32 1.5, %v182_v50 }
  0x51   :  { %v174_v57 = vmul.f32 %v261_v35, %v173_v54  ;;  %v158_v58 = vsel %vm157_vm10, %v257_v32, %v154_v51 }
  0x52   :  { %v168_v59 = vsel %vm373_vm4, %v259_v33, %v164_v55  ;;  %v184_v60 = vmul.f32 %v263_v38, %v183_v56 }
  0x53   :  { %v193_v61 = vrot.slane %v168_v59, 4  ;;  %v178_v62 = vsel %vm177_vm13, %v261_v35, %v174_v57 }
  0x54   :  { %v188_v63 = vsel %vm187_vm9, %v263_v38, %v184_v60 }
  0x55   :  { %v194_v0 = vrot.slane %v188_v63, 4  ;;  %v195_v1 = vsel %vm46_vm0, %v158_v58, %v193_v61 }
  0x56   :  { %v199_v2 = vmul.f32 %v195_v1, %v361_v52 }
  0x57   :  { %v196_v3 = vsel %vm46_vm0, %v178_v62, %v194_v0 }
  0x58   :  { %v200_v4 = vmul.f32 %v196_v3, %v363_v53 }
  0x7a   :  { %v205_v7 = vpop.permute.xlu0 %204 }
  0x7b   :  { %v209_v9 = vperm.slane %v205_v7, %v208_v8 }
  0x7d   :  { %v211_v11 = vmul.f32 %v209_v9, %v199_v2  ;;  %v212_v12 = vmul.f32 %v209_v9, %v200_v4 }
  0x82   :  { %v217_v10 = vpop.permute.xlu0 %216 }
  0x83   :  { %v221_v13 = vperm.slane %v217_v10, %v208_v8 }
  0x85   :  { %v223_v52 = vadd.f32 %v221_v13, %v211_v11  ;;  %v224_v14 = vadd.f32 %v221_v13, %v212_v12 }
  0x87   :  { %225 = vst [vmem:[#allocation5] sm:$0xff] %v223_v52 }
  0x88   :  { %226 = vst [vmem:[#allocation5 + $0x8] sm:$0xff] %v224_v14 }
  0x89   :  { %239 = dma.vmem_to_hbm [thread:$0]  %s232_s2, 256, %s234_s24, [#allocation4], %s317_s17, %s317_s17, %s318_s18  }
  0x8a   :  { %314 = dma.done.wait [#allocation4], 256  }
  0x8b   :  { %315 = vsyncadd [#allocation4], 4294967040 }
  0x8c   :  { %244 = vsyncpa [#allocation3], 1 }
  0x8d   :  { %245 = vsyncpa [#allocation4], 1 }

</bundles_post_ra>
